<compile_context>
chip_gen: v5e
topology: v5e:2x2
jax: 0.10.0
libtpu: 0.0.40
codegen_flags: <defaults>
</compile_context>

<pallas_src>
import jax
import jax.numpy as jnp
from jax.experimental import pallas as pl
from jax.experimental.pallas import tpu as pltpu


def _round_up(x, m):
    return ((x + m - 1) // m) * m


def policy_mlp_kernel(x_ref, w1_ref, b1_ref, w2_ref, b2_ref, o_ref):
    # Cast the streamed f32 activations to the matmul dtype in-register
    # (avoids a separate HBM convert pass over x in the wrapper).
    x = x_ref[...].astype(w1_ref.dtype)

    # Hidden layer on the MXU: (TB,S) @ (S,H) -> f32 accumulate.
    h = jnp.dot(x, w1_ref[...], preferred_element_type=jnp.float32)
    # Bias + ReLU in f32 on the VPU (v5e has no bf16 VPU path).
    h = jnp.maximum(h + b1_ref[...], 0.0)

    # Output layer: (TB,H) @ (H,A_pad) -> f32 accumulate.
    logits = jnp.dot(h.astype(w2_ref.dtype), w2_ref[...],
                     preferred_element_type=jnp.float32)
    logits = logits + b2_ref[...]

    # Numerically-stable softmax over the lane-padded (128-wide) action axis.
    # Padded columns carry bias -1e30 -> exp underflows to exactly 0, so they
    # do not perturb the max or the denominator.
    m = jnp.max(logits, axis=-1, keepdims=True)
    e = jnp.exp(logits - m)
    denom = jnp.sum(e, axis=-1, keepdims=True)
    probs = e / denom  # exact normalize: rows sum to 1 (log-probs downstream)

    # Store only the real action columns; the padded axis never reaches HBM.
    a = o_ref.shape[-1]
    o_ref[...] = probs[:, :a].astype(o_ref.dtype)


def policy_forward(x, w1, b1, w2, b2, *, block_b=2048, use_bf16_matmul=True):
    """x: (B, S) f32; w1: (S, H); b1: (1, H); w2: (H, A); b2: (1, A)."""
    B, S = x.shape
    Sw, H = w1.shape
    Hw, A = w2.shape
    assert S == Sw and H == Hw and b1.shape == (1, H) and b2.shape == (1, A)

    # --- Lane-pad the action axis for in-kernel math only -------------------
    # Zero weight columns + bias -1e30 => softmax contribution exactly 0.
    A_pad = _round_up(max(A, 128), 128)
    pad_a = A_pad - A
    w2_p = jnp.pad(w2, ((0, 0), (0, pad_a)))
    b2_p = jnp.pad(b2, ((0, 0), (0, pad_a)), constant_values=-1e30)

    # --- Matmul dtype (weights are tiny + VMEM-resident; one-time cast) -----
    mm_dtype = jnp.bfloat16 if use_bf16_matmul else jnp.float32
    w1_k = w1.astype(mm_dtype)
    w2_k = w2_p.astype(mm_dtype)

    # --- Batch tiling --------------------------------------------------------
    # Size TB to amortize the ~0.35us fixed per-grid-step overhead against HBM
    # time; VMEM is not the constraint (even TB=8192 double-buffers to a few
    # MiB, far under v7x's 32 MiB scoped default). Keep the grid length even
    # when the batch spans multiple tiles so "parallel" can use both v7x TCs.
    row_align = 16 if mm_dtype == jnp.bfloat16 else 8
    B_aligned = _round_up(B, row_align)
    TB = min(_round_up(block_b, row_align), B_aligned)
    n_tiles = -(-B_aligned // TB)
    if n_tiles > 1 and n_tiles % 2 == 1:
        n_tiles += 1
        TB = _round_up(-(-B_aligned // n_tiles), row_align)
    B_pad = n_tiles * TB

    x_k = x  # keep f32; kernel casts in-register (no extra HBM convert pass)
    if B_pad != B:
        x_k = jnp.pad(x_k, ((0, B_pad - B), (0, 0)))

    # --- Advisory cost estimate so XLA can overlap this small call ----------
    cost = pl.CostEstimate(
        flops=2 * B_pad * (S * H + H * A_pad),
        transcendentals=B_pad * A_pad,
        bytes_accessed=(x_k.size * x_k.dtype.itemsize
                        + w1_k.size * w1_k.dtype.itemsize
                        + w2_k.size * w2_k.dtype.itemsize
                        + b1.size * 4 + b2_p.size * 4
                        + B_pad * A * 4),
    )

    out = pl.pallas_call(
        policy_mlp_kernel,
        out_shape=jax.ShapeDtypeStruct((B_pad, A), jnp.float32),
        grid=(n_tiles,),
        in_specs=[
            pl.BlockSpec((TB, S), lambda i: (i, 0)),      # x: streamed over batch
            pl.BlockSpec((S, H), lambda i: (0, 0)),       # w1: VMEM-resident
            pl.BlockSpec((1, H), lambda i: (0, 0)),       # b1: VMEM-resident
            pl.BlockSpec((H, A_pad), lambda i: (0, 0)),   # w2: VMEM-resident
            pl.BlockSpec((1, A_pad), lambda i: (0, 0)),   # b2: VMEM-resident
        ],
        out_specs=pl.BlockSpec((TB, A), lambda i: (i, 0)),  # unpadded store
        compiler_params=pltpu.CompilerParams(
            dimension_semantics=("parallel",)),           # 2 TCs on v7x
        cost_estimate=cost,
    )(x_k, w1_k, b1, w2_k, b2_p)

    return out[:B] if B_pad != B else out


def ref_forward(x, w1, b1, w2, b2, *, use_bf16_matmul=True):
    """Plain-JAX reference with the same precision policy as the kernel."""
    mm = jnp.bfloat16 if use_bf16_matmul else jnp.float32
    h = jnp.dot(x.astype(mm), w1.astype(mm),
                preferred_element_type=jnp.float32) + b1
    h = jnp.maximum(h, 0.0)
    logits = jnp.dot(h.astype(mm), w2.astype(mm),
                     preferred_element_type=jnp.float32) + b2
    return jax.nn.softmax(logits, axis=-1)


def init_policy_params(key, state_dim, action_dim, hidden=128):
    # Mimics nn.Linear default init: U(-1/sqrt(fan_in), 1/sqrt(fan_in)).
    k1, k2, k3, k4 = jax.random.split(key, 4)
    bound1 = 1.0 / jnp.sqrt(jnp.float32(state_dim))
    bound2 = 1.0 / jnp.sqrt(jnp.float32(hidden))
    w1 = jax.random.uniform(k1, (state_dim, hidden), jnp.float32, -bound1, bound1)
    b1 = jax.random.uniform(k2, (1, hidden), jnp.float32, -bound1, bound1)
    w2 = jax.random.uniform(k3, (hidden, action_dim), jnp.float32, -bound2, bound2)
    b2 = jax.random.uniform(k4, (1, action_dim), jnp.float32, -bound2, bound2)
    return w1, b1, w2, b2


# TODO(synk): update() (Adam step / REINFORCE loss) and predict()'s host-side
# numpy plumbing are training/host logic, intentionally not part of this
# forward-pass kernel.

if __name__ == "__main__":
    state_dim, action_dim, batch = 16, 8, 2

    key = jax.random.PRNGKey(0)
    pkey, xkey, x2key = jax.random.split(key, 3)
    w1, b1, w2, b2 = init_policy_params(pkey, state_dim, action_dim)

    # Small-batch smoke test (grid = 1, padded batch tile).
    x = jax.random.normal(xkey, (batch, state_dim), dtype=jnp.float32)
    out = jax.block_until_ready(policy_forward(x, w1, b1, w2, b2))

    ref_bf16 = ref_forward(x, w1, b1, w2, b2, use_bf16_matmul=True)
    ref_f32 = ref_forward(x, w1, b1, w2, b2, use_bf16_matmul=False)
    assert out.shape == (batch, action_dim)
    assert jnp.allclose(out, ref_bf16, atol=1e-3, rtol=1e-3)
    assert jnp.allclose(out, ref_f32, atol=5e-2)
    assert jnp.allclose(jnp.sum(out, axis=-1), 1.0, atol=1e-3)

    # Exercise the batch grid: uneven batch, multiple pipelined tiles
    # (3 tiles -> bumped to an even grid for v7x megacore sharding).
    xb = jax.random.normal(x2key, (37, state_dim), dtype=jnp.float32)
    outb = jax.block_until_ready(
        policy_forward(xb, w1, b1, w2, b2, block_b=16))
    refb = ref_forward(xb, w1, b1, w2, b2, use_bf16_matmul=True)
    assert outb.shape == (37, action_dim)
    assert jnp.allclose(outb, refb, atol=1e-3, rtol=1e-3)
    assert jnp.allclose(jnp.sum(outb, axis=-1), 1.0, atol=1e-3)

    print("KERNEL_OK")
</pallas_src>

<mosaic_0001>
module attributes {stable_mosaic.version = 11 : i64} {
  func.func @policy_mlp_kernel(%arg0: i32, %arg1: memref<16x16xf32, #tpu.memory_space<vmem>>, %arg2: memref<16x128xbf16, #tpu.memory_space<vmem>>, %arg3: memref<1x128xf32, #tpu.memory_space<vmem>>, %arg4: memref<128x128xbf16, #tpu.memory_space<vmem>>, %arg5: memref<1x128xf32, #tpu.memory_space<vmem>>, %arg6: memref<16x8xf32, #tpu.memory_space<vmem>>) attributes {dimension_semantics = [#tpu.dimension_semantics<parallel>], iteration_bounds = array<i64: 1>, scalar_prefetch = 0 : i64, scratch_operands = 0 : i64, tpu.core_type = #tpu.core_type<tc>, window_params = [{transform_indices = @transform_0, window_bounds = array<i64: 16, 16>}, {pipeline_mode = #tpu.pipeline_mode<synchronous>, transform_indices = @transform_1, window_bounds = array<i64: 16, 128>}, {pipeline_mode = #tpu.pipeline_mode<synchronous>, transform_indices = @transform_2, window_bounds = array<i64: 1, 128>}, {pipeline_mode = #tpu.pipeline_mode<synchronous>, transform_indices = @transform_3, window_bounds = array<i64: 128, 128>}, {pipeline_mode = #tpu.pipeline_mode<synchronous>, transform_indices = @transform_4, window_bounds = array<i64: 1, 128>}, {transform_indices = @transform_5, window_bounds = array<i64: 16, 8>}]} {
    %c0 = arith.constant 0 : index
    %c0_0 = arith.constant 0 : index
    %0 = vector.load %arg1[%c0, %c0_0] : memref<16x16xf32, #tpu.memory_space<vmem>>, vector<16x16xf32>
    %1 = arith.truncf %0 : vector<16x16xf32> to vector<16x16xbf16>
    %c0_1 = arith.constant 0 : index
    %c0_2 = arith.constant 0 : index
    %2 = vector.load %arg2[%c0_1, %c0_2] : memref<16x128xbf16, #tpu.memory_space<vmem>>, vector<16x128xbf16>
    %cst = arith.constant dense<0.000000e+00> : vector<16x128xf32>
    %3 = tpu.matmul %1, %2, %cst {dimension_numbers = #tpu.dot_dimension_numbers<[1], [0], [0], [1], [0, 0, 1, 1], [], []>} : vector<16x16xbf16>, vector<16x128xbf16>, vector<16x128xf32> -> vector<16x128xf32>
    %c0_3 = arith.constant 0 : index
    %c0_4 = arith.constant 0 : index
    %4 = vector.load %arg3[%c0_3, %c0_4] : memref<1x128xf32, #tpu.memory_space<vmem>>, vector<1x128xf32>
    %5 = vector.broadcast %4 : vector<1x128xf32> to vector<16x128xf32>
    %6 = arith.addf %3, %5 : vector<16x128xf32>
    %cst_5 = arith.constant 0.000000e+00 : f32
    %7 = vector.broadcast %cst_5 : f32 to vector<16x128xf32>
    %8 = arith.maximumf %6, %7 : vector<16x128xf32>
    %9 = arith.truncf %8 : vector<16x128xf32> to vector<16x128xbf16>
    %c0_6 = arith.constant 0 : index
    %c0_7 = arith.constant 0 : index
    %10 = vector.load %arg4[%c0_6, %c0_7] : memref<128x128xbf16, #tpu.memory_space<vmem>>, vector<128x128xbf16>
    %cst_8 = arith.constant dense<0.000000e+00> : vector<16x128xf32>
    %11 = tpu.matmul %9, %10, %cst_8 {dimension_numbers = #tpu.dot_dimension_numbers<[1], [0], [0], [1], [0, 0, 1, 1], [], []>} : vector<16x128xbf16>, vector<128x128xbf16>, vector<16x128xf32> -> vector<16x128xf32>
    %c0_9 = arith.constant 0 : index
    %c0_10 = arith.constant 0 : index
    %12 = vector.load %arg5[%c0_9, %c0_10] : memref<1x128xf32, #tpu.memory_space<vmem>>, vector<1x128xf32>
    %13 = vector.broadcast %12 : vector<1x128xf32> to vector<16x128xf32>
    %14 = arith.addf %11, %13 : vector<16x128xf32>
    %cst_11 = arith.constant dense<0xFF800000> : vector<16xf32>
    %15 = vector.multi_reduction <maximumf>, %14, %cst_11 [1] : vector<16x128xf32> to vector<16xf32>
    %16 = vector.shape_cast %15 : vector<16xf32> to vector<16x1xf32>
    %17 = vector.broadcast %16 : vector<16x1xf32> to vector<16x128xf32>
    %18 = arith.subf %14, %17 : vector<16x128xf32>
    %19 = math.exp %18 : vector<16x128xf32>
    %cst_12 = arith.constant dense<0.000000e+00> : vector<16xf32>
    %20 = vector.multi_reduction <add>, %19, %cst_12 [1] : vector<16x128xf32> to vector<16xf32>
    %21 = vector.shape_cast %20 : vector<16xf32> to vector<16x1xf32>
    %22 = vector.broadcast %21 : vector<16x1xf32> to vector<16x128xf32>
    %23 = arith.divf %19, %22 : vector<16x128xf32>
    %24 = vector.extract_strided_slice %23 {offsets = [0, 0], sizes = [16, 8], strides = [1, 1]} : vector<16x128xf32> to vector<16x8xf32>
    %c0_13 = arith.constant 0 : index
    %c0_14 = arith.constant 0 : index
    %25 = vector.load %arg6[%c0_13, %c0_14] : memref<16x8xf32, #tpu.memory_space<vmem>>, vector<16x8xf32>
    tpu.vector_store %arg6[%c0_13, %c0_14], %24 {strides = array<i32>} : memref<16x8xf32, #tpu.memory_space<vmem>>, vector<16x8xf32>,
    return
  }
  func.func @transform_0(%arg0: i32) -> (i32, i32) {
    %c0_i32 = arith.constant 0 : i32
    %c0_i32_0 = arith.constant 0 : i32
    return %arg0, %c0_i32 : i32, i32
  }
  func.func @transform_1(%arg0: i32) -> (i32, i32) {
    %c0_i32 = arith.constant 0 : i32
    %c0_i32_0 = arith.constant 0 : i32
    %c0_i32_1 = arith.constant 0 : i32
    return %c0_i32, %c0_i32_0 : i32, i32
  }
  func.func @transform_2(%arg0: i32) -> (i32, i32) {
    %c0_i32 = arith.constant 0 : i32
    %c0_i32_0 = arith.constant 0 : i32
    %c0_i32_1 = arith.constant 0 : i32
    return %c0_i32, %c0_i32_0 : i32, i32
  }
  func.func @transform_3(%arg0: i32) -> (i32, i32) {
    %c0_i32 = arith.constant 0 : i32
    %c0_i32_0 = arith.constant 0 : i32
    %c0_i32_1 = arith.constant 0 : i32
    return %c0_i32, %c0_i32_0 : i32, i32
  }
  func.func @transform_4(%arg0: i32) -> (i32, i32) {
    %c0_i32 = arith.constant 0 : i32
    %c0_i32_0 = arith.constant 0 : i32
    %c0_i32_1 = arith.constant 0 : i32
    return %c0_i32, %c0_i32_0 : i32, i32
  }
  func.func @transform_5(%arg0: i32) -> (i32, i32) {
    %c0_i32 = arith.constant 0 : i32
    %c0_i32_0 = arith.constant 0 : i32
    return %arg0, %c0_i32 : i32, i32
  }
}

</mosaic_0001>

<bundles_post_ra>
// kernel: tpu_custom_call.1
= control target key start
LH: loop header
LB: loop body
LE: loop exit
PB: predicated region body
PF: predicated region fallthrough
CT: control target
= control target key end

     0   :  { %10 = vsyncpa [#allocation3], 0  ;;  %s438_s0 = inlined_call_operand.hbm [shape: f32[16,16], index: 0, kind: input, shape index: {}]   ;;  %s439_s1 = inlined_call_operand.hbm [shape: bf16[16,128], index: 1, kind: input, shape index: {}]   ;;  %s440_s2 = inlined_call_operand.vmem [shape: f32[1,128], index: 2, kind: input, shape index: {}]   ;;  %s441_s3 = inlined_call_operand.hbm [shape: bf16[128,128], index: 3, kind: input, shape index: {}]   ;;  %s442_s4 = inlined_call_operand.vmem [shape: f32[1,128], index: 4, kind: input, shape index: {}]   ;;  %s443_s5 = inlined_call_operand.vmem [shape: f32[16,8], index: 5, kind: output, shape index: {}]  }
   0x1   :  { %11 = vsyncpa [#allocation5], 0  ;;  %s29_s20 = sshll.u32 %s439_s1, 4  ;;  %s378_s21 = smov [#allocation4]   ;;  %s30_s20 = int_to_ptr.hbm [resolvable:$true] %s29_s20 }
   0x2   :  { %s31_s22 = sshll.u32 %s378_s21, 4  ;;  %s16_s25 = sshll.u32 %s438_s0, 4  ;;  %s32_s22 = int_to_ptr.vmem [resolvable:$true] %s31_s22  ;;  %s17_s25 = int_to_ptr.hbm [resolvable:$true] %s16_s25 }
   0x3   :  { %s379_s26 = smov 64   ;;  %s380_s27 = smov 4  }
   0x4   :  { %37 = dma.hbm_to_vmem [thread:$0]  %s30_s20, 128, %s32_s22, [#allocation5], %s379_s26, %s379_s26, %s380_s27  }
   0x5   :  { %s381_s28 = smov [#allocation2]   ;;  %s382_s30 = smov 128  }
   0x6   :  { %s18_s29 = sshll.u32 %s381_s28, 4  ;;  %s383_s6 = smov 8   ;;  %s19_s29 = int_to_ptr.vmem [resolvable:$true] %s18_s29 }
   0x7   :  { %24 = dma.hbm_to_vmem [thread:$0]  %s17_s25, 256, %s19_s29, [#allocation3], %s382_s30, %s382_s30, %s383_s6  }
   0x8   :  { %s44_s8 = sshll.u32 %s441_s3, 4  ;;  %s384_s9 = smov [#allocation6]   ;;  %s45_s8 = int_to_ptr.hbm [resolvable:$true] %s44_s8 }
   0x9   :  { %s46_s10 = sshll.u32 %s384_s9, 4  ;;  %s47_s10 = int_to_ptr.vmem [resolvable:$true] %s46_s10 }
   0xa   :  { %52 = dma.hbm_to_vmem [thread:$0]  %s45_s8, 1024, %s47_s10, [#allocation5], %s379_s26, %s379_s26, %s380_s27  }
   0xb   :  { %374 = dma.done.wait [#allocation3], 256  }
   0xc   :  { %375 = vsyncadd [#allocation3], 4294967040 }
   0xd   :  { %376 = dma.done.wait [#allocation5], 1152  }
   0xe   :  { %377 = vsyncadd [#allocation5], 4294966144  ;;  %v276_v0 = vld [vmem:[#allocation4] sm:$0xff]  ;;  %v68_v1 = vld [vmem:[#allocation2] sm:$0xff]  ;;  %vm83_vm0 = vcmask 130048   ;;  %vm230_vm5 = vcmask 64512  }
   0xf   :  { %v69_v2 = vld [vmem:[#allocation2 + $0x8] sm:$0xff]  ;;  %v284_v4 = vld [vmem:[#allocation6 + $0x38] sm:$0xff]  ;;  %94 = vmatpush.bf16.msra.mxu0 %v276_v0  ;;  %v282_v6 = vld [vmem:[#allocation6 + $0x28] sm:$0xff] }
  0x10   :  { %v70_v3 = vpack.c.bf16 %v69_v2, %v68_v1  ;;  %172 = vmatpush.bf16.msra.mxu1 %v284_v4  ;;  %v283_v5 = vld [vmem:[#allocation6 + $0x30] sm:$0xff]  ;;  %v281_v7 = vld [vmem:[#allocation6 + $0x20] sm:$0xff]  ;;  %v280_v8 = vld [vmem:[#allocation6 + $0x18] sm:$0xff] }
  0x11   :  { %v279_v9 = vld [vmem:[#allocation6 + $0x10] sm:$0xff]  ;;  %v278_v10 = vld [vmem:[#allocation6 + $0x8] sm:$0xff]  ;;  %v277_v11 = vld [vmem:[#allocation6] sm:$0xff] }
  0x12   :  { %243 = vmatmul.msk.bf16.vlgmr.msra.gmra.mxu0 %vm83_vm0, %v70_v3  ;;  %v292_v13 = vld [vmem:[%s440_s2] ss:$0 sm:$0xff] }
  0x13   :  { %v293_v20 = vld [vmem:[%s442_s4] ss:$0 sm:$0xff] }
  0x14   :  { %173 = vmatpush.bf16.msra.mxu1 %v283_v5 }
  0x18   :  { %174 = vmatpush.bf16.msra.mxu1 %v282_v6 }
  0x1c   :  { %175 = vmatpush.bf16.msra.mxu1 %v281_v7 }
  0x20   :  { %176 = vmatpush.bf16.msra.mxu1 %v280_v8 }
  0x24   :  { %177 = vmatpush.bf16.msra.mxu1 %v279_v9 }
  0x28   :  { %178 = vmatpush.bf16.msra.mxu1 %v278_v10 }
  0x2c   :  { %179 = vmatpush.bf16.msra.mxu1 %v277_v11 }
  0x8f   :  { %v96_v12 = vpop.f32.mrf.mxu0 }
  0x90   :  { %v97_v14 = vadd.f32 %v292_v13, %v96_v12 }
  0x92   :  { %v101_v17 = vmax.f32 %v97_v14, 0.0 }
  0x97   :  { %v98_v15 = vpop.f32.mrf.mxu0 }
  0x98   :  { %v99_v16 = vadd.f32 %v292_v13, %v98_v15 }
  0x9a   :  { %v102_v18 = vmax.f32 %v99_v16, 0.0 }
  0x9c   :  { %v103_v19 = vpack.c.bf16 %v102_v18, %v101_v17 }
  0x9e   :  { %180 = vmatmul.bf16.vlgmr.msra.gmra.mxu1 %v103_v19 }
 0x11b   :  { %v181_v21 = vpop.f32.mrf.mxu1 }
 0x11c   :  { %v182_v22 = vadd.f32 %v293_v20, %v181_v21 }
 0x11e   :  { %186 = vmax.xlane.f32.xlu0 %v182_v22 }
 0x123   :  { %v183_v23 = vpop.f32.mrf.mxu1 }
 0x124   :  { %v184_v24 = vadd.f32 %v293_v20, %v183_v23 }
 0x126   :  { %188 = vmax.xlane.f32.xlu0 %v184_v24 }
 0x191   :  { %v187_v25 = vpop.xlane.xlu0 %186 }
 0x192   :  { %v190_v26 = vsub.f32 %v182_v22, %v187_v25 }
 0x194   :  { %v192_v27 = vmul.f32 1.442695, %v190_v26 }
 0x196   :  { %294 = vpow2.f32 %v192_v27 }
 0x199   :  { %v189_v28 = vpop.xlane.xlu0 %188 }
 0x19a   :  { %v191_v29 = vsub.f32 %v184_v24, %v189_v28 }
 0x19c   :  { %v295_v30 = vpop.eup %294  ;;  %v194_v31 = vmul.f32 1.442695, %v191_v29 }
 0x19d   :  { %196 = vadd.xlane.f32.xlu1 %v295_v30 }
 0x19e   :  { %296 = vpow2.f32 %v194_v31 }
 0x1a4   :  { %v297_v32 = vpop.eup %296 }
 0x1a5   :  { %198 = vadd.xlane.f32.xlu1 %v297_v32 }
 0x210   :  { %v197_v33 = vpop.xlane.xlu1 %196 }
 0x211   :  { %298 = vrcp.f32 %v197_v33  ;;  %v211_v38 = vand.u32 2147483648, %v197_v33  ;;  %v209_v40 = vand.u32 2147483647, %v197_v33  ;;  %vm205_vm2 = vweird.f32 %v197_v33 }
 0x213   :  { %v212_v43 = vor.u32 1.1754944e-38, %v211_v38  ;;  %vm210_vm4 = vcmp.eq.f32.partialorder %v209_v40, 8.507059e+37 }
 0x217   :  { %v299_v34 = vpop.eup %298 }
 0x218   :  { %v201_v35 = vmul.f32 %v299_v34, %v197_v33  ;;  %v199_v36 = vpop.xlane.xlu1 %198  ;;  %vm206_vm1 = vweird.f32 %v299_v34 }
 0x219   :  { %300 = vrcp.f32 %v199_v36  ;;  %vm207_vm3 = vmor %vm205_vm2, %vm206_vm1  ;;  %v226_v49 = vand.u32 2147483648, %v199_v36  ;;  %v224_v51 = vand.u32 2147483647, %v199_v36  ;;  %vm220_vm7 = vweird.f32 %v199_v36 }
 0x21a   :  { %v202_v37 = vsub.f32 1.0, %v201_v35 }
 0x21b   :  { %v227_v53 = vor.u32 1.1754944e-38, %v226_v49  ;;  %vm225_vm9 = vcmp.eq.f32.partialorder %v224_v51, 8.507059e+37 }
 0x21c   :  { %v203_v39 = vmul.f32 %v299_v34, %v202_v37 }
 0x21e   :  { %v204_v41 = vadd.f32 %v299_v34, %v203_v39 }
 0x21f   :  { %v301_v42 = vpop.eup %300 }
 0x220   :  { %v208_v44 = vsel %vm207_vm3, %v299_v34, %v204_v41  ;;  %v216_v45 = vmul.f32 %v301_v42, %v199_v36  ;;  %vm221_vm6 = vweird.f32 %v301_v42 }
 0x221   :  { %v213_v46 = vsel %vm210_vm4, %v212_v43, %v208_v44  ;;  %vm222_vm8 = vmor %vm220_vm7, %vm221_vm6 }
 0x222   :  { %v214_v47 = vmul.f32 %v295_v30, %v213_v46  ;;  %v217_v48 = vsub.f32 1.0, %v216_v45 }
 0x224   :  { %231 = vst.msk [vmem:[%s443_s5] sm:$0xff] %vm230_vm5, %v214_v47  ;;  %v218_v50 = vmul.f32 %v301_v42, %v217_v48 }
 0x226   :  { %v219_v52 = vadd.f32 %v301_v42, %v218_v50 }
 0x228   :  { %v223_v54 = vsel %vm222_vm8, %v301_v42, %v219_v52 }
 0x229   :  { %v228_v55 = vsel %vm225_vm9, %v227_v53, %v223_v54 }
 0x22a   :  { %v229_v56 = vmul.f32 %v297_v32, %v228_v55 }
 0x22c   :  { %232 = vst.msk [vmem:[%s443_s5 + $0x8] sm:$0xff] %vm230_vm5, %v229_v56 }
 0x22d   :  { %237 = vsyncpa [#allocation3], 1 }
 0x22e   :  { %238 = vsyncpa [#allocation5], 1 }

</bundles_post_ra>
